<compile_context>
chip_gen: v5e
topology: v5e:2x2
jax: 0.10.0
libtpu: 0.0.40
codegen_flags: <defaults>
</compile_context>

<pallas_src>
import numpy as np

import jax
import jax.numpy as jnp
from jax.experimental import pallas as pl
from jax.experimental.pallas import tpu as pltpu


# -----------------------------------------------------------------------------
# Static banded moving-average matrix (includes replicate-pad edge weights).
# -----------------------------------------------------------------------------
def _band_matrix(L, kernel_size):
    """(L, L) f32 matrix A such that trend = A @ x (time on the first axis),
    equal to AvgPool1d(kernel_size, stride=1) with (k-1)//2 replicate padding."""
    pad = (kernel_size - 1) // 2
    taps = np.arange(kernel_size) - pad
    cols = np.clip(np.arange(L)[:, None] + taps[None, :], 0, L - 1)
    rows = np.repeat(np.arange(L), kernel_size)
    counts = np.zeros((L, L), dtype=np.float64)
    np.add.at(counts, (rows, cols.ravel()), 1.0)
    return jnp.asarray((counts / float(kernel_size)).astype(np.float32))


# -----------------------------------------------------------------------------
# Kernel: one lane-dense (L, TC) column tile of the (L, B*C) slab.
#   trend  = A @ x      (MXU, fp32 contraction)
#   season = x - trend  (VPU)
# -----------------------------------------------------------------------------
def _series_decomp_kernel(a_ref, x_ref, season_ref, trend_ref):
    xf = x_ref[...].astype(jnp.float32)                       # (L, TC)
    trend = jnp.dot(
        a_ref[...], xf,
        precision=jax.lax.Precision.HIGHEST,                  # full-f32 contraction
        preferred_element_type=jnp.float32,
    )
    trend_ref[...] = trend.astype(trend_ref.dtype)
    season_ref[...] = (xf - trend).astype(season_ref.dtype)


# -----------------------------------------------------------------------------
# Tiling helpers.
# -----------------------------------------------------------------------------
def _tpu_vmem_capacity_bytes():
    try:
        cap = getattr(pltpu.get_tpu_info(), "vmem_capacity_bytes", None)
        if cap:
            return int(cap)
    except Exception:
        pass
    return 64 << 20   # conservative default (v7x per-TensorCore VMEM)


def _pick_col_tile(N, per_col_bytes, budget_bytes):
    """Lane-dense column tile for the (L, N) slab."""
    if N <= 128:
        return N                                   # full extent: always legal
    max_cols = max(128, int(budget_bytes) // max(per_col_bytes, 1))
    tile = (max_cols // 128) * 128
    if N >= 256:
        # Keep at least two grid points so both v7x TensorCores get work.
        half = ((-(-N // 2)) + 127) // 128 * 128
        tile = min(tile, half)
    tile = max(tile, 128)
    return N if tile >= N else tile


# -----------------------------------------------------------------------------
# Fused series decomposition:  x (B, L, C)  ->  (season, trend), both (B, L, C).
# -----------------------------------------------------------------------------
def series_decomp(x, kernel_size):
    assert kernel_size % 2 == 1, "series_decomp requires an odd moving_avg kernel"
    B, L, C = x.shape
    N = B * C
    itemsize = jnp.dtype(x.dtype).itemsize

    # Lane-dense slab: time on sublanes, folded (batch, channel) on lanes.
    x_slab = jnp.transpose(x, (1, 0, 2)).reshape(L, N)
    A = _band_matrix(L, kernel_size)                           # (L, L) f32

    cap = _tpu_vmem_capacity_bytes()
    budget = max(4 << 20, cap // 8)                            # per-step working set
    # Per-column bytes: double-buffered input + two double-buffered outputs
    # + in-kernel f32 intermediates (xf upcast, trend, season).
    per_col = L * (6 * itemsize + 12)
    tile = _pick_col_tile(N, per_col, budget)
    n_tiles = pl.cdiv(N, tile)

    est_bytes = tile * per_col + 2 * (L * L * 4)               # + resident A (x2)
    vmem_limit = None
    if 2 * est_bytes > (16 << 20):                             # above v5e scoped default
        vmem_limit = int(min(max(2 * est_bytes, 16 << 20), cap // 2, 48 << 20))

    a_spec = pl.BlockSpec((L, L), lambda j: (0, 0))            # VMEM-resident
    slab_spec = pl.BlockSpec((L, tile), lambda j: (0, j))

    cost = pl.CostEstimate(
        flops=2 * L * L * N,                                   # dense banded matmul
        transcendentals=0,
        bytes_accessed=3 * L * N * itemsize + L * L * 4,
    )

    season2, trend2 = pl.pallas_call(
        _series_decomp_kernel,
        out_shape=(
            jax.ShapeDtypeStruct((L, N), x.dtype),             # season
            jax.ShapeDtypeStruct((L, N), x.dtype),             # trend
        ),
        grid_spec=pltpu.PrefetchScalarGridSpec(
            num_scalar_prefetch=0,
            grid=(n_tiles,),
            in_specs=[a_spec, slab_spec],
            out_specs=(slab_spec, slab_spec),
        ),
        compiler_params=pltpu.CompilerParams(
            dimension_semantics=("parallel",),
            vmem_limit_bytes=vmem_limit,
        ),
        cost_estimate=cost,
    )(A, x_slab)

    season = season2.reshape(L, B, C).transpose(1, 0, 2)
    trend = trend2.reshape(L, B, C).transpose(1, 0, 2)
    return season, trend


# -----------------------------------------------------------------------------
# Pure-JAX reference (mirrors the PyTorch moving_avg / series_decomp forward).
# -----------------------------------------------------------------------------
def _series_decomp_ref(x, kernel_size):
    pad = (kernel_size - 1) // 2
    xf = x.astype(jnp.float32)
    front = jnp.repeat(xf[:, 0:1, :], pad, axis=1)
    end = jnp.repeat(xf[:, -1:, :], pad, axis=1)
    xpad = jnp.concatenate([front, xf, end], axis=1)
    L = x.shape[1]
    windows = jnp.stack([xpad[:, j:j + L, :] for j in range(kernel_size)], axis=0)
    trend = jnp.mean(windows, axis=0)
    season = xf - trend
    return season.astype(x.dtype), trend.astype(x.dtype)


if __name__ == "__main__":
    key = jax.random.PRNGKey(0)
    kernel_size = 25                       # typical configs.moving_avg
    B, seq_len, d_model = 2, 96, 16        # small shapes consistent with the module
    keys = jax.random.split(key, 8)

    # Multi-scale input list exactly like PastDecomposableMixing.forward receives
    # (T = seq_len // down_sampling_window**i); the last scale exercises L < k.
    x_list = [
        jax.random.normal(keys[i], (B, seq_len // (2 ** i), d_model), jnp.float32)
        for i in range(4)
    ]
    # TODO(synk): the NAS `Cell` / Nas_mix mixers, cross/out_cross Linear+GELU
    # layers, LayerNorm/Dropout and the uni_scale resamplers of
    # PastDecomposableMixing are not translated (Cell / candidate_op_profiles
    # are undefined in the spec); only the decomposition core is a Pallas kernel.
    # TODO(synk): DFT_series_decomp branch (rfft/topk/irfft) has no clean Pallas
    # TPU equivalent and is not implemented.

    for x in x_list:
        season, trend = jax.block_until_ready(series_decomp(x, kernel_size))
        season_r, trend_r = _series_decomp_ref(x, kernel_size)
        assert season.shape == x.shape and trend.shape == x.shape
        assert jnp.allclose(trend, trend_r, atol=1e-4, rtol=1e-4), "trend mismatch"
        assert jnp.allclose(season, season_r, atol=1e-4, rtol=1e-4), "season mismatch"

    # Lane-dense (B*C = 256) f32 check — exercises the multi-tile grid path.
    x_wide = jax.random.normal(keys[4], (2, 64, 128), jnp.float32)
    s_w, t_w = jax.block_until_ready(series_decomp(x_wide, kernel_size))
    s_wr, t_wr = _series_decomp_ref(x_wide, kernel_size)
    assert jnp.allclose(t_w, t_wr, atol=1e-4, rtol=1e-4)
    assert jnp.allclose(s_w, s_wr, atol=1e-4, rtol=1e-4)

    # bf16 check (packed tiles); kernel upcasts and contracts in f32 internally.
    x_bf = jax.random.normal(keys[5], (2, 64, 128), jnp.float32).astype(jnp.bfloat16)
    s_b, t_b = jax.block_until_ready(series_decomp(x_bf, kernel_size))
    s_br, t_br = _series_decomp_ref(x_bf, kernel_size)
    assert jnp.allclose(t_b.astype(jnp.float32), t_br.astype(jnp.float32),
                        atol=2e-2, rtol=2e-2)
    assert jnp.allclose(s_b.astype(jnp.float32), s_br.astype(jnp.float32),
                        atol=2e-2, rtol=2e-2)

    print("KERNEL_OK")
</pallas_src>

<mosaic_0001>
module attributes {stable_mosaic.version = 11 : i64} {
  func.func @_series_decomp_kernel(%arg0: i32, %arg1: memref<96x96xf32, #tpu.memory_space<vmem>>, %arg2: memref<96x32xf32, #tpu.memory_space<vmem>>, %arg3: memref<96x32xf32, #tpu.memory_space<vmem>>, %arg4: memref<96x32xf32, #tpu.memory_space<vmem>>) attributes {dimension_semantics = [#tpu.dimension_semantics<parallel>], iteration_bounds = array<i64: 1>, scalar_prefetch = 0 : i64, scratch_operands = 0 : i64, tpu.core_type = #tpu.core_type<tc>, window_params = [{pipeline_mode = #tpu.pipeline_mode<synchronous>, transform_indices = @transform_0, window_bounds = array<i64: 96, 96>}, {transform_indices = @transform_1, window_bounds = array<i64: 96, 32>}, {transform_indices = @transform_2, window_bounds = array<i64: 96, 32>}, {transform_indices = @transform_3, window_bounds = array<i64: 96, 32>}]} {
    %c0 = arith.constant 0 : index
    %c0_0 = arith.constant 0 : index
    %0 = vector.load %arg2[%c0, %c0_0] : memref<96x32xf32, #tpu.memory_space<vmem>>, vector<96x32xf32>
    %c0_1 = arith.constant 0 : index
    %c0_2 = arith.constant 0 : index
    %1 = vector.load %arg1[%c0_1, %c0_2] : memref<96x96xf32, #tpu.memory_space<vmem>>, vector<96x96xf32>
    %cst = arith.constant dense<0.000000e+00> : vector<96x32xf32>
    %2 = tpu.matmul %1, %0, %cst {dimension_numbers = #tpu.dot_dimension_numbers<[1], [0], [0], [1], [0, 0, 1, 1], [], []>, precision = #tpu.contract_precision<fp32>} : vector<96x96xf32>, vector<96x32xf32>, vector<96x32xf32> -> vector<96x32xf32>
    %c0_3 = arith.constant 0 : index
    %c0_4 = arith.constant 0 : index
    %3 = vector.load %arg4[%c0_3, %c0_4] : memref<96x32xf32, #tpu.memory_space<vmem>>, vector<96x32xf32>
    tpu.vector_store %arg4[%c0_3, %c0_4], %2 {strides = array<i32>} : memref<96x32xf32, #tpu.memory_space<vmem>>, vector<96x32xf32>,
    %4 = arith.subf %0, %2 : vector<96x32xf32>
    %c0_5 = arith.constant 0 : index
    %c0_6 = arith.constant 0 : index
    %5 = vector.load %arg3[%c0_5, %c0_6] : memref<96x32xf32, #tpu.memory_space<vmem>>, vector<96x32xf32>
    tpu.vector_store %arg3[%c0_5, %c0_6], %4 {strides = array<i32>} : memref<96x32xf32, #tpu.memory_space<vmem>>, vector<96x32xf32>,
    return
  }
  func.func @transform_0(%arg0: i32) -> (i32, i32) {
    %c0_i32 = arith.constant 0 : i32
    %c0_i32_0 = arith.constant 0 : i32
    %c0_i32_1 = arith.constant 0 : i32
    return %c0_i32, %c0_i32_0 : i32, i32
  }
  func.func @transform_1(%arg0: i32) -> (i32, i32) {
    %c0_i32 = arith.constant 0 : i32
    %c0_i32_0 = arith.constant 0 : i32
    return %c0_i32, %arg0 : i32, i32
  }
  func.func @transform_2(%arg0: i32) -> (i32, i32) {
    %c0_i32 = arith.constant 0 : i32
    %c0_i32_0 = arith.constant 0 : i32
    return %c0_i32, %arg0 : i32, i32
  }
  func.func @transform_3(%arg0: i32) -> (i32, i32) {
    %c0_i32 = arith.constant 0 : i32
    %c0_i32_0 = arith.constant 0 : i32
    return %c0_i32, %arg0 : i32, i32
  }
}

</mosaic_0001>

<bundles_post_ra>
// kernel: tpu_custom_call.1
= control target key start
LH: loop header
LB: loop body
LE: loop exit
PB: predicated region body
PF: predicated region fallthrough
CT: control target
= control target key end

     0   :  { %vm37_vm0 = vcmask 785408   ;;  %vm704_vm1 = vcmask 261120   ;;  %s1416_s1 = inlined_call_operand.vmem [shape: f32[96,32], index: 1, kind: input, shape index: {}]   ;;  %s1417_s0 = inlined_call_operand.vmem [shape: f32[96,96], index: 0, kind: input, shape index: {}]   ;;  %s1418_s3 = inlined_call_operand.vmem [shape: f32[96,32], index: 3, kind: output, shape index: {1}]   ;;  %s1419_s2 = inlined_call_operand.vmem [shape: f32[96,32], index: 2, kind: output, shape index: {0}]  }
   0x1   :  { %v796_v0 = vld [vmem:[%s1416_s1 + $0x58] sm:$0xff]  ;;  %v801_v1 = vld [vmem:[%s1416_s1 + $0x50] sm:$0xff]  ;;  %v806_v2 = vld [vmem:[%s1416_s1 + $0x48] sm:$0xff] }
   0x2   :  { %v809_v3 = vand.u32 4294901760, %v796_v0  ;;  %v812_v4 = vand.u32 4294901760, %v801_v1  ;;  %v815_v5 = vand.u32 4294901760, %v806_v2  ;;  %v820_v6 = vld [vmem:[%s1416_s1 + $0x40] sm:$0xff]  ;;  %v825_v7 = vld [vmem:[%s1416_s1 + $0x38] sm:$0xff]  ;;  %v830_v8 = vld [vmem:[%s1416_s1 + $0x30] sm:$0xff] }
   0x3   :  { %v833_v9 = vand.u32 4294901760, %v820_v6  ;;  %v836_v10 = vand.u32 4294901760, %v825_v7  ;;  %v839_v11 = vand.u32 4294901760, %v830_v8  ;;  %v844_v12 = vld [vmem:[%s1416_s1 + $0x28] sm:$0xff]  ;;  %v849_v13 = vld [vmem:[%s1416_s1 + $0x20] sm:$0xff]  ;;  %v868_v17 = vld [vmem:[%s1416_s1 + $0x18] sm:$0xff] }
   0x4   :  { %749 = vmatpush.msra.mxu2 %v809_v3  ;;  %v854_v14 = vsub.f32 %v796_v0, %v809_v3  ;;  %v858_v15 = vsub.f32 %v801_v1, %v812_v4  ;;  %v862_v16 = vsub.f32 %v806_v2, %v815_v5  ;;  %79 = vmatpush.msra.mxu0 %v809_v3  ;;  %v871_v18 = vand.u32 4294901760, %v844_v12  ;;  %v892_v25 = vld [vmem:[%s1416_s1 + $0x10] sm:$0xff]  ;;  %v917_v33 = vld [vmem:[%s1416_s1 + $0x8] sm:$0xff]  ;;  %v946_v44 = vld [vmem:[%s1416_s1] sm:$0xff] }
   0x5   :  { %v875_v19 = vsub.f32 %v820_v6, %v833_v9  ;;  %v879_v20 = vsub.f32 %v825_v7, %v836_v10  ;;  %v886_v24 = vand.u32 4294901760, %v849_v13  ;;  %v896_v27 = vand.u32 4294901760, %v868_v17  ;;  %v31_v37 = vld [vmem:[%s1417_s0 + $0x30] sm:$0xff]  ;;  %v32_v49 = vld [vmem:[%s1417_s0 + $0x38] sm:$0xff]  ;;  %v25_v56 = vld [vmem:[%s1417_s0] sm:$0xff] }
   0x6   :  { %750 = vmatpush.msra.mxu2 %v812_v4  ;;  %v1432_v21 = vand.u32 4294901760, %v854_v14  ;;  %v1429_v22 = vand.u32 4294901760, %v858_v15  ;;  %v1428_v23 = vand.u32 4294901760, %v862_v16  ;;  %81 = vmatpush.msra.mxu0 %v812_v4  ;;  %v900_v28 = vsub.f32 %v830_v8, %v839_v11  ;;  %v33_v63 = vld [vmem:[%s1417_s0 + $0x40] sm:$0xff] }
   0x7   :  { %v1426_v26 = vand.u32 4294901760, %v875_v19  ;;  %v1425_v32 = vand.u32 4294901760, %v879_v20  ;;  %v923_v35 = vand.u32 4294901760, %v892_v25  ;;  %v927_v36 = vsub.f32 %v844_v12, %v871_v18 }
   0x8   :  { %751 = vmatpush.msra.mxu2 %v815_v5  ;;  %v206_v29 = vsub.f32 %v854_v14, %v1432_v21  ;;  %v212_v30 = vsub.f32 %v858_v15, %v1429_v22  ;;  %v218_v31 = vsub.f32 %v862_v16, %v1428_v23  ;;  %83 = vmatpush.msra.mxu0 %v815_v5  ;;  %v1424_v40 = vand.u32 4294901760, %v900_v28 }
   0x9   :  { %v224_v34 = vsub.f32 %v875_v19, %v1426_v26  ;;  %v937_v41 = vsub.f32 %v849_v13, %v886_v24  ;;  %v940_v42 = vand.u32 4294901760, %v917_v33  ;;  %v1422_v43 = vand.u32 4294901760, %v927_v36  ;;  %v34_v26 = vld [vmem:[%s1417_s0 + $0x48] sm:$0xff] }
   0xa   :  { %752 = vmatpush.msra.mxu2 %v833_v9  ;;  %v207_v38 = vand.u32 4294901760, %v206_v29  ;;  %v213_v39 = vand.u32 4294901760, %v212_v30  ;;  %85 = vmatpush.msra.mxu0 %v833_v9  ;;  %v219_v45 = vand.u32 4294901760, %v218_v31  ;;  %v230_v46 = vsub.f32 %v879_v20, %v1425_v32 }
   0xb   :  { %v57_v47 = vsel %vm37_vm0, %v31_v37, 0  ;;  %v955_v48 = vsub.f32 %v868_v17, %v896_v27  ;;  %v1420_v50 = vand.u32 4294901760, %v937_v41  ;;  %v225_v52 = vand.u32 4294901760, %v224_v34  ;;  %v26_v37 = vld [vmem:[%s1417_s0 + $0x8] sm:$0xff] }
   0xc   :  { %753 = vmatpush.msra.mxu2 %v836_v10  ;;  %761 = vmatpush.msra.mxu3 %v207_v38  ;;  %v961_v51 = vand.u32 4294901760, %v57_v47  ;;  %v236_v53 = vsub.f32 %v900_v28, %v1424_v40  ;;  %v969_v54 = vand.u32 4294901760, %v946_v44  ;;  %v973_v55 = vsub.f32 %v892_v25, %v923_v35 }
   0xd   :  { %208 = vmatpush.msra.mxu1 %v207_v38  ;;  %87 = vmatpush.msra.mxu0 %v836_v10  ;;  %v242_v57 = vsub.f32 %v927_v36, %v1422_v43  ;;  %v60_v59 = vsel %vm37_vm0, %v32_v49, 0  ;;  %v231_v60 = vand.u32 4294901760, %v230_v46  ;;  %v1423_v61 = vand.u32 4294901760, %v955_v48 }
   0xe   :  { %754 = vmatpush.msra.mxu2 %v839_v11  ;;  %762 = vmatpush.msra.mxu3 %v213_v39  ;;  %v982_v58 = vsub.f32 %v57_v47, %v961_v51  ;;  %v990_v62 = vsub.f32 %v917_v33, %v940_v42  ;;  %v248_v29 = vsub.f32 %v937_v41, %v1420_v50  ;;  %v1000_v31 = vand.u32 4294901760, %v60_v59 }
   0xf   :  { %214 = vmatpush.msra.mxu1 %v213_v39  ;;  %89 = vmatpush.msra.mxu0 %v839_v11  ;;  %v39_v34 = vsel %vm37_vm0, %v25_v56, 0  ;;  %v237_v38 = vand.u32 4294901760, %v236_v53  ;;  %v1427_v39 = vand.u32 4294901760, %v973_v55  ;;  %v243_v47 = vand.u32 4294901760, %v242_v57 }
  0x10   :  { %755 = vmatpush.msra.mxu2 %v871_v18  ;;  %763 = vmatpush.msra.mxu3 %v219_v45  ;;  %v1421_v30 = vand.u32 4294901760, %v982_v58  ;;  %v1012_v46 = vand.u32 4294901760, %v39_v34  ;;  %v1019_v56 = vsub.f32 %v60_v59, %v1000_v31  ;;  %v63_v53 = vsel %vm37_vm0, %v33_v63, 0  ;;  %v27_v63 = vld [vmem:[%s1417_s0 + $0x10] sm:$0xff] }
  0x11   :  { %220 = vmatpush.msra.mxu1 %v219_v45  ;;  %91 = vmatpush.msra.mxu0 %v871_v18  ;;  %v1010_v45 = vsub.f32 %v946_v44, %v969_v54  ;;  %v254_v50 = vsub.f32 %v955_v48, %v1423_v61  ;;  %v249_v43 = vand.u32 4294901760, %v248_v29  ;;  %v45_v23 = vsel %vm37_vm0, %v27_v63, 0 }
  0x12   :  { %756 = vmatpush.msra.mxu2 %v886_v24  ;;  %764 = vmatpush.msra.mxu3 %v225_v52  ;;  %v153_v49 = vsub.f32 %v982_v58, %v1421_v30  ;;  %v1028_v57 = vsub.f32 %v39_v34, %v1012_v46  ;;  %v42_v30 = vsel %vm37_vm0, %v26_v37, 0  ;;  %v260_v34 = vsub.f32 %v973_v55, %v1427_v39 }
  0x13   :  { %226 = vmatpush.msra.mxu1 %v225_v52  ;;  %93 = vmatpush.msra.mxu0 %v886_v24  ;;  %v1430_v52 = vand.u32 4294901760, %v990_v62  ;;  %v1032_v59 = vand.u32 4294901760, %v42_v30  ;;  %v271_v61 = vand.u32 4294901760, %v1010_v45  ;;  %v1433_v40 = vand.u32 4294901760, %v1019_v56 }
  0x14   :  { %757 = vmatpush.msra.mxu2 %v896_v27  ;;  %765 = vmatpush.msra.mxu3 %v231_v60  ;;  %v1431_v29 = vand.u32 4294901760, %v1028_v57  ;;  %v154_v37 = vand.u32 4294901760, %v153_v49  ;;  %v255_v39 = vand.u32 4294901760, %v254_v50  ;;  %v1074_v21 = vand.u32 4294901760, %v45_v23 }
  0x15   :  { %232 = vmatpush.msra.mxu1 %v231_v60  ;;  %95 = vmatpush.msra.mxu0 %v896_v27  ;;  %v1043_v60 = vand.u32 4294901760, %v63_v53  ;;  %v1048_v32 = vsub.f32 %v42_v30, %v1032_v59  ;;  %v266_v49 = vsub.f32 %v990_v62, %v1430_v52  ;;  %v261_v30 = vand.u32 4294901760, %v260_v34 }
  0x16   :  { %758 = vmatpush.msra.mxu2 %v923_v35  ;;  %766 = vmatpush.msra.mxu3 %v237_v38  ;;  %v272_v50 = vsub.f32 %v1010_v45, %v271_v61  ;;  %v66_v52 = vsel %vm37_vm0, %v34_v26, 0  ;;  %v28_v26 = vld [vmem:[%s1417_s0 + $0x18] sm:$0xff] }
  0x17   :  { %238 = vmatpush.msra.mxu1 %v237_v38  ;;  %97 = vmatpush.msra.mxu0 %v923_v35  ;;  %v105_v38 = vsub.f32 %v1028_v57, %v1431_v29  ;;  %v1067_v22 = vsub.f32 %v63_v53, %v1043_v60  ;;  %v112_v29 = vand.u32 4294901760, %v1048_v32  ;;  %v267_v34 = vand.u32 4294901760, %v266_v49 }
  0x18   :  { %759 = vmatpush.msra.mxu2 %v940_v42  ;;  %767 = vmatpush.msra.mxu3 %v243_v47  ;;  %v1082_v53 = vand.u32 4294901760, %v66_v52 }
  0x19   :  { %244 = vmatpush.msra.mxu1 %v243_v47  ;;  %99 = vmatpush.msra.mxu0 %v940_v42  ;;  %v161_v47 = vsub.f32 %v1019_v56, %v1433_v40  ;;  %v106_v63 = vand.u32 4294901760, %v105_v38  ;;  %v168_v49 = vand.u32 4294901760, %v1067_v22  ;;  %v1089_v38 = vsub.f32 %v45_v23, %v1074_v21 }
  0x1a   :  { %760 = vmatpush.msra.mxu2 %v969_v54  ;;  %768 = vmatpush.msra.mxu3 %v249_v43 }
  0x1b   :  { %155 = vmatmul.f32.vlgmr.msra.gmra.mxu2 %v154_v37  ;;  %250 = vmatpush.msra.mxu1 %v249_v43  ;;  %v273_v43 = vand.u32 4294901760, %v272_v50  ;;  %v162_v37 = vand.u32 4294901760, %v161_v47  ;;  %v35_v50 = vld [vmem:[%s1417_s0 + $0x50] sm:$0xff]  ;;  %v48_v47 = vsel %vm37_vm0, %v28_v26, 0  ;;  %v169_v40 = vsub.f32 %v1067_v22, %v168_v49 }
  0x1c   :  { %769 = vmatpush.msra.mxu3 %v255_v39  ;;  %330 = vmatpush.msrb.mxu2 %v854_v14  ;;  %v69_v23 = vsel %vm37_vm0, %v35_v50, 0 }
  0x1d   :  { %256 = vmatpush.msra.mxu1 %v255_v39  ;;  %101 = vmatpush.msra.mxu0 %v969_v54  ;;  %v113_v39 = vsub.f32 %v1048_v32, %v112_v29  ;;  %v170_v50 = vand.u32 4294901760, %v169_v40  ;;  %v1437_v40 = vand.u32 4294901760, %v862_v16 }
  0x1e   :  { %770 = vmatpush.msra.mxu3 %v261_v30  ;;  %333 = vmatpush.msrb.mxu2 %v858_v15 }
  0x1f   :  { %262 = vmatpush.msra.mxu1 %v261_v30  ;;  %107 = vmatmul.f32.vlgmr.msra.gmra.mxu0 %v106_v63  ;;  %v1435_v30 = vand.u32 4294901760, %v854_v14  ;;  %v1100_v63 = vsub.f32 %v66_v52, %v1082_v53  ;;  %v114_v26 = vand.u32 4294901760, %v113_v39  ;;  %v1108_v14 = vand.u32 4294901760, %v48_v47 }
  0x20   :  { %771 = vmatpush.msra.mxu3 %v267_v34  ;;  %336 = vmatpush.msrb.mxu2 %v862_v16  ;;  %v1436_v52 = vand.u32 4294901760, %v858_v15  ;;  %v1119_v39 = vand.u32 4294901760, %v69_v23 }
  0x21   :  { %268 = vmatpush.msra.mxu1 %v267_v34  ;;  %533 = vmatpush.msrb.mxu0 %v1435_v30  ;;  %v120_v34 = vand.u32 4294901760, %v1089_v38  ;;  %v1127_v30 = vsub.f32 %v48_v47, %v1108_v14 }
  0x22   :  { %772 = vmatpush.msra.mxu3 %v273_v43  ;;  %339 = vmatpush.msrb.mxu2 %v875_v19  ;;  %v1141_v47 = vsub.f32 %v69_v23, %v1119_v39  ;;  %v30_v23 = vld [vmem:[%s1417_s0 + $0x28] sm:$0xff] }
  0x23   :  { %163 = vmatmul.f32.gmra.mxu2 %v162_v37  ;;  %300 = vmatmul.f32.vlgmr.msra.gmra.mxu3 %v961_v51  ;;  %v29_v37 = vld [vmem:[%s1417_s0 + $0x20] sm:$0xff]  ;;  %v121_v15 = vsub.f32 %v1089_v38, %v120_v34 }
  0x24   :  { %430 = vmatpush.msrb.mxu3 %v809_v3  ;;  %274 = vmatpush.msra.mxu1 %v273_v43  ;;  %v1434_v43 = vand.u32 4294901760, %v1100_v63 }
  0x25   :  { %276 = vmatmul.f32.vlgmr.msra.gmra.mxu1 %v1012_v46  ;;  %537 = vmatpush.msrb.mxu0 %v1436_v52  ;;  %v122_v16 = vand.u32 4294901760, %v121_v15  ;;  %v128_v52 = vand.u32 4294901760, %v1127_v30 }
  0x26   :  { %432 = vmatpush.msrb.mxu3 %v812_v4  ;;  %632 = vmatpush.msrb.mxu1 %v809_v3  ;;  %v51_v3 = vsel %vm37_vm0, %v29_v37, 0 }
  0x27   :  { %342 = vmatpush.msrb.mxu2 %v879_v20  ;;  %115 = vmatmul.f32.gmra.mxu0 %v114_v26  ;;  %v36_v26 = vld [vmem:[%s1417_s0 + $0x58] sm:$0xff]  ;;  %v1148_v37 = vand.u32 4294901760, %v51_v3 }
  0x28   :  { %434 = vmatpush.msrb.mxu3 %v815_v5  ;;  %634 = vmatpush.msrb.mxu1 %v812_v4  ;;  %v177_v4 = vsub.f32 %v1100_v63, %v1434_v43  ;;  %v1439_v43 = vand.u32 4294901760, %v879_v20 }
  0x29   :  { %541 = vmatpush.msrb.mxu0 %v1437_v40  ;;  %345 = vmatpush.msrb.mxu2 %v900_v28  ;;  %v1438_v40 = vand.u32 4294901760, %v875_v19  ;;  %v129_v19 = vsub.f32 %v1127_v30, %v128_v52 }
  0x2a   :  { %436 = vmatpush.msrb.mxu3 %v833_v9  ;;  %636 = vmatpush.msrb.mxu1 %v815_v5  ;;  %v72_v5 = vsel %vm37_vm0, %v36_v26, 0  ;;  %v178_v15 = vand.u32 4294901760, %v177_v4 }
  0x2b   :  { %171 = vmatmul.f32.gmra.mxu2 %v170_v50  ;;  %304 = vmatmul.f32.gmra.mxu3 %v1000_v31  ;;  %v184_v50 = vand.u32 4294901760, %v1141_v47  ;;  %v1166_v26 = vand.u32 4294901760, %v72_v5  ;;  %v130_v20 = vand.u32 4294901760, %v129_v19  ;;  %v1442_v19 = vand.u32 4294901760, %v937_v41 }
  0x2c   :  { %438 = vmatpush.msrb.mxu3 %v836_v10  ;;  %545 = vmatpush.msrb.mxu0 %v1438_v40  ;;  %v1169_v40 = vsub.f32 %v51_v3, %v1148_v37  ;;  %v1440_v3 = vand.u32 4294901760, %v900_v28  ;;  %v1441_v28 = vand.u32 4294901760, %v927_v36 }
  0x2d   :  { %280 = vmatmul.f32.gmra.mxu1 %v1032_v59  ;;  %348 = vmatpush.msrb.mxu2 %v927_v36  ;;  %v185_v4 = vsub.f32 %v1141_v47, %v184_v50 }
  0x2e   :  { %440 = vmatpush.msrb.mxu3 %v839_v11  ;;  %638 = vmatpush.msrb.mxu1 %v833_v9  ;;  %v54_v9 = vsel %vm37_vm0, %v30_v23, 0 }
  0x2f   :  { %123 = vmatmul.f32.gmra.mxu0 %v122_v16  ;;  %351 = vmatpush.msrb.mxu2 %v937_v41  ;;  %v1188_v16 = vand.u32 4294901760, %v54_v9  ;;  %v186_v23 = vand.u32 4294901760, %v185_v4 }
  0x30   :  { %442 = vmatpush.msrb.mxu3 %v871_v18  ;;  %549 = vmatpush.msrb.mxu0 %v1439_v43  ;;  %v1185_v43 = vsub.f32 %v72_v5, %v1166_v26 }
  0x31   :  { %640 = vmatpush.msrb.mxu1 %v836_v10  ;;  %354 = vmatpush.msrb.mxu2 %v955_v48  ;;  %v136_v10 = vand.u32 4294901760, %v1169_v40 }
  0x32   :  { %444 = vmatpush.msrb.mxu3 %v886_v24  ;;  %553 = vmatpush.msrb.mxu0 %v1440_v3  ;;  %v192_v5 = vand.u32 4294901760, %v1185_v43  ;;  %v1445_v3 = vand.u32 4294901760, %v990_v62 }
  0x33   :  { %179 = vmatmul.f32.gmra.mxu2 %v178_v15  ;;  %308 = vmatmul.f32.gmra.mxu3 %v1043_v60  ;;  %v137_v15 = vsub.f32 %v1169_v40, %v136_v10 }
  0x34   :  { %642 = vmatpush.msrb.mxu1 %v839_v11  ;;  %446 = vmatpush.msrb.mxu3 %v896_v27  ;;  %v143_v11 = vsub.f32 %v54_v9, %v1188_v16  ;;  %v193_v36 = vsub.f32 %v1185_v43, %v192_v5 }
  0x35   :  { %284 = vmatmul.f32.gmra.mxu1 %v1074_v21  ;;  %557 = vmatpush.msrb.mxu0 %v1441_v28  ;;  %v138_v41 = vand.u32 4294901760, %v137_v15 }
  0x36   :  { %357 = vmatpush.msrb.mxu2 %v973_v55  ;;  %644 = vmatpush.msrb.mxu1 %v871_v18  ;;  %v1443_v18 = vand.u32 4294901760, %v955_v48  ;;  %v144_v9 = vand.u32 4294901760, %v143_v11  ;;  %v194_v48 = vand.u32 4294901760, %v193_v36 }
  0x37   :  { %131 = vmatmul.f32.gmra.mxu0 %v130_v20  ;;  %448 = vmatpush.msrb.mxu3 %v923_v35 }
  0x38   :  { %561 = vmatpush.msrb.mxu0 %v1442_v19  ;;  %360 = vmatpush.msrb.mxu2 %v990_v62  ;;  %v145_v4 = vsub.f32 %v143_v11, %v144_v9 }
  0x39   :  { %646 = vmatpush.msrb.mxu1 %v886_v24  ;;  %450 = vmatpush.msrb.mxu3 %v940_v42  ;;  %v1444_v24 = vand.u32 4294901760, %v973_v55 }
  0x3a   :  { %363 = vmatpush.msrb.mxu2 %v1010_v45  ;;  %565 = vmatpush.msrb.mxu0 %v1443_v18 }
  0x3b   :  { %187 = vmatmul.f32.gmra.mxu2 %v186_v23  ;;  %312 = vmatmul.f32.gmra.mxu3 %v1082_v53 }
  0x3c   :  { %648 = vmatpush.msrb.mxu1 %v896_v27  ;;  %452 = vmatpush.msrb.mxu3 %v969_v54  ;;  %v146_v27 = vand.u32 4294901760, %v145_v4 }
  0x3d   :  { %288 = vmatmul.f32.gmra.mxu1 %v1108_v14  ;;  %569 = vmatpush.msrb.mxu0 %v1444_v24 }
  0x3e   :  { %650 = vmatpush.msrb.mxu1 %v923_v35  ;;  %v1446_v35 = vand.u32 4294901760, %v1028_v57 }
  0x3f   :  { %139 = vmatmul.f32.gmra.mxu0 %v138_v41 }
  0x40   :  { %573 = vmatpush.msrb.mxu0 %v1445_v3  ;;  %652 = vmatpush.msrb.mxu1 %v940_v42  ;;  %v1449_v42 = vand.u32 4294901760, %v1100_v63 }
  0x42   :  { %577 = vmatpush.msrb.mxu0 %v271_v61  ;;  %654 = vmatpush.msrb.mxu1 %v969_v54 }
  0x43   :  { %195 = vmatmul.f32.gmra.mxu2 %v194_v48  ;;  %316 = vmatmul.f32.gmra.mxu3 %v1119_v39 }
  0x45   :  { %292 = vmatmul.f32.gmra.mxu1 %v1148_v37 }
  0x47   :  { %147 = vmatmul.f32.gmra.mxu0 %v146_v27 }
  0x4b   :  { %320 = vmatmul.f32.gmra.mxu3 %v1166_v26  ;;  %366 = vmatmul.f32.vlgmr.msrb.gmra.mxu2 %v1028_v57 }
  0x4d   :  { %296 = vmatmul.f32.gmra.mxu1 %v1188_v16 }
  0x4f   :  { %579 = vmatmul.f32.vlgmr.msrb.gmra.mxu0 %v1012_v46 }
  0x53   :  { %371 = vmatmul.f32.gmra.mxu2 %v1048_v32  ;;  %456 = vmatmul.f32.vlgmr.msrb.gmra.mxu3 %v1446_v35  ;;  %v1448_v32 = vand.u32 4294901760, %v1019_v56 }
  0x55   :  { %656 = vmatmul.f32.vlgmr.msrb.gmra.mxu1 %v1012_v46 }
  0x57   :  { %583 = vmatmul.f32.gmra.mxu0 %v1032_v59 }
  0x5b   :  { %376 = vmatmul.f32.gmra.mxu2 %v1089_v38  ;;  %462 = vmatmul.f32.gmra.mxu3 %v112_v29 }
  0x5d   :  { %660 = vmatmul.f32.gmra.mxu1 %v1032_v59 }
  0x5f   :  { %587 = vmatmul.f32.gmra.mxu0 %v1074_v21 }
  0x63   :  { %381 = vmatmul.f32.gmra.mxu2 %v1127_v30  ;;  %468 = vmatmul.f32.gmra.mxu3 %v120_v34 }
  0x65   :  { %664 = vmatmul.f32.gmra.mxu1 %v1074_v21  ;;  %v1447_v21 = vand.u32 4294901760, %v982_v58 }
  0x67   :  { %591 = vmatmul.f32.gmra.mxu0 %v1108_v14 }
  0x6b   :  { %386 = vmatmul.f32.gmra.mxu2 %v1169_v40  ;;  %474 = vmatmul.f32.gmra.mxu3 %v128_v52 }
  0x6d   :  { %668 = vmatmul.f32.gmra.mxu1 %v1108_v14 }
  0x6f   :  { %595 = vmatmul.f32.gmra.mxu0 %v1148_v37 }
  0x73   :  { %391 = vmatmul.f32.gmra.mxu2 %v143_v11  ;;  %480 = vmatmul.f32.gmra.mxu3 %v136_v10 }
  0x75   :  { %672 = vmatmul.f32.gmra.mxu1 %v1148_v37 }
  0x77   :  { %599 = vmatmul.f32.gmra.mxu0 %v1188_v16 }
  0x7b   :  { %396 = vmatmul.f32.gmra.mxu2 %v982_v58  ;;  %486 = vmatmul.f32.gmra.mxu3 %v144_v9 }
  0x7d   :  { %676 = vmatmul.f32.gmra.mxu1 %v1188_v16 }
  0x7f   :  { %603 = vmatmul.f32.gmra.mxu0 %v961_v51 }
  0x83   :  { %401 = vmatmul.f32.gmra.mxu2 %v1019_v56  ;;  %492 = vmatmul.f32.gmra.mxu3 %v1447_v21 }
  0x85   :  { %680 = vmatmul.f32.gmra.mxu1 %v961_v51 }
  0x87   :  { %607 = vmatmul.f32.gmra.mxu0 %v1000_v31 }
  0x8b   :  { %406 = vmatmul.f32.gmra.mxu2 %v1067_v22  ;;  %498 = vmatmul.f32.gmra.mxu3 %v1448_v32 }
  0x8d   :  { %684 = vmatmul.f32.gmra.mxu1 %v1000_v31 }
  0x8f   :  { %611 = vmatmul.f32.gmra.mxu0 %v1043_v60 }
  0x93   :  { %411 = vmatmul.f32.gmra.mxu2 %v1100_v63  ;;  %504 = vmatmul.f32.gmra.mxu3 %v168_v49 }
  0x95   :  { %688 = vmatmul.f32.gmra.mxu1 %v1043_v60 }
  0x97   :  { %615 = vmatmul.f32.gmra.mxu0 %v1082_v53 }
  0x9b   :  { %416 = vmatmul.f32.gmra.mxu2 %v1141_v47  ;;  %510 = vmatmul.f32.gmra.mxu3 %v1449_v42 }
  0x9c   :  { %v108_v51 = vpop.f32.mrf.mxu0 }
  0x9d   :  { %692 = vmatmul.f32.gmra.mxu1 %v1082_v53 }
  0x9e   :  { %v156_v54 = vpop.f32.mrf.mxu2 }
  0x9f   :  { %619 = vmatmul.f32.gmra.mxu0 %v1119_v39 }
  0xa2   :  { %v277_v55 = vpop.f32.mrf.mxu1 }
  0xa3   :  { %421 = vmatmul.f32.gmra.mxu2 %v1185_v43  ;;  %516 = vmatmul.f32.gmra.mxu3 %v184_v50  ;;  %v278_v28 = vadd.f32 %v277_v55, %v108_v51 }
  0xa4   :  { %v116_v22 = vpop.f32.mrf.mxu0 }
  0xa5   :  { %696 = vmatmul.f32.gmra.mxu1 %v1119_v39 }
  0xa6   :  { %v164_v58 = vpop.f32.mrf.mxu2  ;;  %v301_v61 = vpop.f32.mrf.mxu3 }
  0xa7   :  { %v1280_v62 = vadd.f32 %v301_v61, %v156_v54  ;;  %623 = vmatmul.f32.gmra.mxu0 %v1166_v26 }
  0xaa   :  { %v281_v31 = vpop.f32.mrf.mxu1 }
  0xab   :  { %522 = vmatmul.f32.gmra.mxu3 %v192_v5  ;;  %v282_v41 = vadd.f32 %v281_v31, %v116_v22 }
  0xac   :  { %v124_v45 = vpop.f32.mrf.mxu0 }
  0xad   :  { %700 = vmatmul.f32.gmra.mxu1 %v1166_v26 }
  0xae   :  { %v172_v46 = vpop.f32.mrf.mxu2  ;;  %v305_v56 = vpop.f32.mrf.mxu3 }
  0xaf   :  { %v1286_v57 = vadd.f32 %v305_v56, %v164_v58 }
  0xb2   :  { %v285_v59 = vpop.f32.mrf.mxu1 }
  0xb3   :  { %v286_v42 = vadd.f32 %v285_v59, %v124_v45 }
  0xb4   :  { %v132_v29 = vpop.f32.mrf.mxu0 }
  0xb6   :  { %v180_v60 = vpop.f32.mrf.mxu2  ;;  %v309_v53 = vpop.f32.mrf.mxu3 }
  0xb7   :  { %v1288_v49 = vadd.f32 %v309_v53, %v172_v46 }
  0xba   :  { %v289_v38 = vpop.f32.mrf.mxu1 }
  0xbb   :  { %v290_v46 = vadd.f32 %v289_v38, %v132_v29 }
  0xbc   :  { %v140_v63 = vpop.f32.mrf.mxu0 }
  0xbe   :  { %v188_v34 = vpop.f32.mrf.mxu2  ;;  %v313_v14 = vpop.f32.mrf.mxu3 }
  0xbf   :  { %v1290_v39 = vadd.f32 %v313_v14, %v180_v60 }
  0xc2   :  { %v293_v30 = vpop.f32.mrf.mxu1 }
  0xc3   :  { %v294_v38 = vadd.f32 %v293_v30, %v140_v63 }
  0xc4   :  { %v1292_v47 = vpop.f32.mrf.mxu0 }
  0xc6   :  { %v196_v52 = vpop.f32.mrf.mxu2  ;;  %v317_v37 = vpop.f32.mrf.mxu3 }
  0xc7   :  { %v1294_v50 = vadd.f32 %v317_v37, %v188_v34 }
  0xca   :  { %v1296_v26 = vpop.f32.mrf.mxu1 }
  0xcb   :  { %v298_v30 = vadd.f32 %v1296_v26, %v1292_v47 }
  0xcc   :  { %v580_v40 = vpop.f32.mrf.mxu0 }
  0xce   :  { %v321_v20 = vpop.f32.mrf.mxu3  ;;  %v367_v43 = vpop.f32.mrf.mxu2 }
  0xcf   :  { %v1298_v10 = vadd.f32 %v321_v20, %v196_v52  ;;  %v368_v5 = vadd.f32 %v367_v43, %v278_v28 }
  0xd2   :  { %v657_v16 = vpop.f32.mrf.mxu1 }
  0xd4   :  { %v584_v23 = vpop.f32.mrf.mxu0 }
  0xd6   :  { %v372_v15 = vpop.f32.mrf.mxu2  ;;  %v457_v11 = vpop.f32.mrf.mxu3 }
  0xd7   :  { %v458_v19 = vadd.f32 %v457_v11, %v368_v5  ;;  %v373_v48 = vadd.f32 %v372_v15, %v282_v41 }
  0xd9   :  { %v581_v18 = vadd.f32 %v580_v40, %v458_v19 }
  0xda   :  { %v661_v36 = vpop.f32.mrf.mxu1 }
  0xdb   :  { %v658_v9 = vadd.f32 %v657_v16, %v581_v18 }
  0xdc   :  { %v588_v24 = vpop.f32.mrf.mxu0 }
  0xdd   :  { %705 = vst.msk [vmem:[%s1418_s3] sm:$0xff] %vm704_vm1, %v658_v9  ;;  %v717_v4 = vsub.f32 %v946_v44, %v658_v9 }
  0xde   :  { %v377_v3 = vpop.f32.mrf.mxu2  ;;  %v463_v27 = vpop.f32.mrf.mxu3 }
  0xdf   :  { %729 = vst.msk [vmem:[%s1419_s2] sm:$0xff] %vm704_vm1, %v717_v4  ;;  %v464_v35 = vadd.f32 %v463_v27, %v373_v48  ;;  %v378_v55 = vadd.f32 %v377_v3, %v286_v42 }
  0xe1   :  { %v585_v21 = vadd.f32 %v584_v23, %v464_v35 }
  0xe2   :  { %v665_v32 = vpop.f32.mrf.mxu1 }
  0xe3   :  { %v662_v51 = vadd.f32 %v661_v36, %v585_v21 }
  0xe4   :  { %v592_v54 = vpop.f32.mrf.mxu0 }
  0xe5   :  { %706 = vst.msk [vmem:[%s1418_s3 + $0x8] sm:$0xff] %vm704_vm1, %v662_v51  ;;  %v718_v44 = vsub.f32 %v917_v33, %v662_v51 }
  0xe6   :  { %v382_v22 = vpop.f32.mrf.mxu2  ;;  %v469_v58 = vpop.f32.mrf.mxu3 }
  0xe7   :  { %730 = vst.msk [vmem:[%s1419_s2 + $0x8] sm:$0xff] %vm704_vm1, %v718_v44  ;;  %v470_v61 = vadd.f32 %v469_v58, %v378_v55  ;;  %v383_v60 = vadd.f32 %v382_v22, %v290_v46 }
  0xe9   :  { %v589_v31 = vadd.f32 %v588_v24, %v470_v61 }
  0xea   :  { %v669_v45 = vpop.f32.mrf.mxu1 }
  0xeb   :  { %v666_v56 = vadd.f32 %v665_v32, %v589_v31 }
  0xec   :  { %v596_v59 = vpop.f32.mrf.mxu0 }
  0xed   :  { %707 = vst.msk [vmem:[%s1418_s3 + $0x10] sm:$0xff] %vm704_vm1, %v666_v56  ;;  %v719_v33 = vsub.f32 %v892_v25, %v666_v56 }
  0xee   :  { %v387_v53 = vpop.f32.mrf.mxu2  ;;  %v475_v34 = vpop.f32.mrf.mxu3 }
  0xef   :  { %731 = vst.msk [vmem:[%s1419_s2 + $0x10] sm:$0xff] %vm704_vm1, %v719_v33  ;;  %v476_v14 = vadd.f32 %v475_v34, %v383_v60  ;;  %v388_v20 = vadd.f32 %v387_v53, %v294_v38 }
  0xf1   :  { %v593_v52 = vadd.f32 %v592_v54, %v476_v14 }
  0xf2   :  { %v673_v29 = vpop.f32.mrf.mxu1 }
  0xf3   :  { %v670_v37 = vadd.f32 %v669_v45, %v593_v52 }
  0xf4   :  { %v600_v40 = vpop.f32.mrf.mxu0 }
  0xf5   :  { %708 = vst.msk [vmem:[%s1418_s3 + $0x18] sm:$0xff] %vm704_vm1, %v670_v37  ;;  %v720_v25 = vsub.f32 %v868_v17, %v670_v37 }
  0xf6   :  { %v392_v43 = vpop.f32.mrf.mxu2  ;;  %v481_v16 = vpop.f32.mrf.mxu3 }
  0xf7   :  { %732 = vst.msk [vmem:[%s1419_s2 + $0x18] sm:$0xff] %vm704_vm1, %v720_v25  ;;  %v482_v28 = vadd.f32 %v481_v16, %v388_v20  ;;  %v393_v11 = vadd.f32 %v392_v43, %v298_v30 }
  0xf9   :  { %v597_v23 = vadd.f32 %v596_v59, %v482_v28 }
  0xfa   :  { %v677_v63 = vpop.f32.mrf.mxu1 }
  0xfb   :  { %v674_v5 = vadd.f32 %v673_v29, %v597_v23 }
  0xfc   :  { %v604_v15 = vpop.f32.mrf.mxu0 }
  0xfd   :  { %709 = vst.msk [vmem:[%s1418_s3 + $0x20] sm:$0xff] %vm704_vm1, %v674_v5  ;;  %v721_v17 = vsub.f32 %v849_v13, %v674_v5 }
  0xfe   :  { %v397_v19 = vpop.f32.mrf.mxu2  ;;  %v487_v18 = vpop.f32.mrf.mxu3 }
  0xff   :  { %733 = vst.msk [vmem:[%s1419_s2 + $0x20] sm:$0xff] %vm704_vm1, %v721_v17  ;;  %v488_v36 = vadd.f32 %v487_v18, %v393_v11  ;;  %v398_v9 = vadd.f32 %v397_v19, %v1280_v62 }
 0x101   :  { %v601_v41 = vadd.f32 %v600_v40, %v488_v36 }
 0x102   :  { %v681_v47 = vpop.f32.mrf.mxu1 }
 0x103   :  { %v678_v26 = vadd.f32 %v677_v63, %v601_v41 }
 0x104   :  { %v608_v24 = vpop.f32.mrf.mxu0 }
 0x105   :  { %710 = vst.msk [vmem:[%s1418_s3 + $0x28] sm:$0xff] %vm704_vm1, %v678_v26  ;;  %v722_v13 = vsub.f32 %v844_v12, %v678_v26 }
 0x106   :  { %v402_v48 = vpop.f32.mrf.mxu2  ;;  %v493_v4 = vpop.f32.mrf.mxu3 }
 0x107   :  { %734 = vst.msk [vmem:[%s1419_s2 + $0x28] sm:$0xff] %vm704_vm1, %v722_v13  ;;  %v494_v3 = vadd.f32 %v493_v4, %v398_v9  ;;  %v403_v62 = vadd.f32 %v402_v48, %v1286_v57 }
 0x109   :  { %v605_v27 = vadd.f32 %v604_v15, %v494_v3 }
 0x10a   :  { %v685_v35 = vpop.f32.mrf.mxu1 }
 0x10b   :  { %v682_v21 = vadd.f32 %v681_v47, %v605_v27 }
 0x10c   :  { %v612_v54 = vpop.f32.mrf.mxu0 }
 0x10d   :  { %711 = vst.msk [vmem:[%s1418_s3 + $0x30] sm:$0xff] %vm704_vm1, %v682_v21  ;;  %v723_v12 = vsub.f32 %v830_v8, %v682_v21 }
 0x10e   :  { %v407_v32 = vpop.f32.mrf.mxu2  ;;  %v499_v42 = vpop.f32.mrf.mxu3 }
 0x10f   :  { %735 = vst.msk [vmem:[%s1419_s2 + $0x30] sm:$0xff] %vm704_vm1, %v723_v12  ;;  %v500_v51 = vadd.f32 %v499_v42, %v403_v62  ;;  %v408_v57 = vadd.f32 %v407_v32, %v1288_v49 }
 0x111   :  { %v609_v55 = vadd.f32 %v608_v24, %v500_v51 }
 0x112   :  { %v689_v44 = vpop.f32.mrf.mxu1 }
 0x113   :  { %v686_v22 = vadd.f32 %v685_v35, %v609_v55 }
 0x114   :  { %v616_v46 = vpop.f32.mrf.mxu0 }
 0x115   :  { %712 = vst.msk [vmem:[%s1418_s3 + $0x38] sm:$0xff] %vm704_vm1, %v686_v22  ;;  %v724_v8 = vsub.f32 %v825_v7, %v686_v22 }
 0x116   :  { %v412_v58 = vpop.f32.mrf.mxu2  ;;  %v505_v61 = vpop.f32.mrf.mxu3 }
 0x117   :  { %736 = vst.msk [vmem:[%s1419_s2 + $0x38] sm:$0xff] %vm704_vm1, %v724_v8  ;;  %v506_v31 = vadd.f32 %v505_v61, %v408_v57  ;;  %v413_v49 = vadd.f32 %v412_v58, %v1290_v39 }
 0x119   :  { %v613_v45 = vadd.f32 %v612_v54, %v506_v31 }
 0x11a   :  { %v693_v59 = vpop.f32.mrf.mxu1 }
 0x11b   :  { %v690_v56 = vadd.f32 %v689_v44, %v613_v45 }
 0x11c   :  { %v620_v52 = vpop.f32.mrf.mxu0 }
 0x11d   :  { %713 = vst.msk [vmem:[%s1418_s3 + $0x40] sm:$0xff] %vm704_vm1, %v690_v56  ;;  %v725_v7 = vsub.f32 %v820_v6, %v690_v56 }
 0x11e   :  { %v511_v60 = vpop.f32.mrf.mxu3  ;;  %v417_v53 = vpop.f32.mrf.mxu2 }
 0x11f   :  { %737 = vst.msk [vmem:[%s1419_s2 + $0x40] sm:$0xff] %vm704_vm1, %v725_v7  ;;  %v512_v33 = vadd.f32 %v511_v60, %v413_v49  ;;  %v418_v39 = vadd.f32 %v417_v53, %v1294_v50 }
 0x121   :  { %v617_v34 = vadd.f32 %v616_v46, %v512_v33 }
 0x122   :  { %v697_v38 = vpop.f32.mrf.mxu1 }
 0x123   :  { %v694_v14 = vadd.f32 %v693_v59, %v617_v34 }
 0x124   :  { %v624_v16 = vpop.f32.mrf.mxu0 }
 0x125   :  { %714 = vst.msk [vmem:[%s1418_s3 + $0x48] sm:$0xff] %vm704_vm1, %v694_v14  ;;  %v726_v6 = vsub.f32 %v806_v2, %v694_v14 }
 0x126   :  { %v517_v29 = vpop.f32.mrf.mxu3  ;;  %v422_v20 = vpop.f32.mrf.mxu2 }
 0x127   :  { %738 = vst.msk [vmem:[%s1419_s2 + $0x48] sm:$0xff] %vm704_vm1, %v726_v6  ;;  %v518_v37 = vadd.f32 %v517_v29, %v418_v39  ;;  %v423_v50 = vadd.f32 %v422_v20, %v1298_v10 }
 0x129   :  { %v621_v40 = vadd.f32 %v620_v52, %v518_v37 }
 0x12a   :  { %v701_v23 = vpop.f32.mrf.mxu1 }
 0x12b   :  { %v698_v25 = vadd.f32 %v697_v38, %v621_v40 }
 0x12d   :  { %715 = vst.msk [vmem:[%s1418_s3 + $0x50] sm:$0xff] %vm704_vm1, %v698_v25  ;;  %v727_v2 = vsub.f32 %v801_v1, %v698_v25 }
 0x12e   :  { %v523_v43 = vpop.f32.mrf.mxu3 }
 0x12f   :  { %739 = vst.msk [vmem:[%s1419_s2 + $0x50] sm:$0xff] %vm704_vm1, %v727_v2  ;;  %v524_v28 = vadd.f32 %v523_v43, %v423_v50 }
 0x131   :  { %v625_v63 = vadd.f32 %v624_v16, %v524_v28 }
 0x133   :  { %v702_v30 = vadd.f32 %v701_v23, %v625_v63 }
 0x135   :  { %716 = vst.msk [vmem:[%s1418_s3 + $0x58] sm:$0xff] %vm704_vm1, %v702_v30  ;;  %v728_v10 = vsub.f32 %v796_v0, %v702_v30 }
 0x137   :  { %740 = vst.msk [vmem:[%s1419_s2 + $0x58] sm:$0xff] %vm704_vm1, %v728_v10 }

</bundles_post_ra>
